<compile_context>
chip_gen: v5e
topology: v5e:2x2
jax: 0.10.0
libtpu: 0.0.40
codegen_flags: <defaults>
</compile_context>

<pallas_src>
import jax
import jax.numpy as jnp
from jax.experimental import pallas as pl
from jax.experimental.pallas import tpu as pltpu


def _make_kernel(acc_in_out: bool):
    """Kernel factory. acc_in_out=True -> accumulate directly into o_ref (f32)."""

    def kernel(x_ref, w1_ref, b1_ref, w2_ref, b2_ref, w3_ref, b3_ref,
               o_ref, a1_ref, a2_ref, *acc_scratch):
        acc_ref = o_ref if acc_in_out else acc_scratch[0]
        h = pl.program_id(1)
        fi = pl.program_id(2)
        nh = pl.num_programs(1)
        nf = pl.num_programs(2)

        @pl.when(jnp.logical_and(h == 0, fi == 0))
        def _init_acc():
            acc_ref[...] = jnp.zeros_like(acc_ref)

        @pl.when(fi == 0)
        def _init_partials():
            a1_ref[...] = jnp.zeros_like(a1_ref)
            a2_ref[...] = jnp.zeros_like(a2_ref)

        # Native-dtype inputs straight into the MXU; accumulate partials in f32
        # across the F (in_features) reduction axis.
        x = x_ref[...]
        a1_ref[...] += jnp.dot(x, w1_ref[...], preferred_element_type=jnp.float32)
        a2_ref[...] += jnp.dot(x, w2_ref[...], preferred_element_type=jnp.float32)

        @pl.when(fi == nf - 1)
        def _gate_and_project():
            a1 = a1_ref[...] + b1_ref[...]
            a2 = a2_ref[...] + b2_ref[...]
            # SiLU gate in f32 (exp on EUP, mul on VPU). On v6e/v7x a bf16 gate
            # would halve the temporaries, but f32 keeps numerics tight and the
            # EUP slot is not the bottleneck here.
            gated = (a2 * jax.nn.sigmoid(a2)) * a1
            acc_ref[...] += jnp.dot(gated.astype(w3_ref.dtype), w3_ref[...],
                                    preferred_element_type=jnp.float32)

        @pl.when(jnp.logical_and(h == nh - 1, fi == nf - 1))
        def _finalize():
            if acc_in_out:
                o_ref[...] = acc_ref[...] + b3_ref[...]
            else:
                o_ref[...] = (acc_ref[...] + b3_ref[...]).astype(o_ref.dtype)

    return kernel


def _pick_block(dim, preferred):
    """Largest preferred tile that evenly divides `dim`, else the full dim."""
    for c in preferred:
        if c <= dim and dim % c == 0:
            return c
    return dim


def _batch_tiling(B):
    """Pick (block_b, padded_B).

    Large row tiles give the arithmetic intensity needed to beat the weight
    stream (~>=640 rows on v6e, ~>=310 on v7x, ~>=250 on v5e for bf16); prefer
    >= 2 batch tiles when it costs no intensity so both v7x TensorCores work.
    Awkward batch sizes are padded (never fall back to a tiny divisor or a
    full-B tile that blows VMEM).
    """
    for c in (2048, 1024):
        if B % c == 0 and B // c >= 2:
            return c, B
    for c in (2048, 1024, 512, 256):
        if c <= B and B % c == 0:
            return c, B
    if B <= 1024:
        bb = -(-B // 8) * 8            # single padded tile, sublane-aligned
        return bb, bb
    bb = 512
    return bb, -(-B // bb) * bb


def mlp_forward(x, params, *, block_b=None, block_h=None, block_f=None):
    """x: (B, in_features). params: dict of pre-transposed weights/biases."""
    B, F = x.shape
    H = params["w1"].shape[1]
    C = params["w3"].shape[1]
    dtype = x.dtype
    itemsize = jnp.dtype(dtype).itemsize
    acc_in_out = dtype == jnp.float32   # accumulate straight into o_ref when f32

    # --- tile selection (MXU-aligned, intensity-first) ----------------------
    if block_b is None:
        block_b, B_pad = _batch_tiling(B)
    else:
        B_pad = -(-B // block_b) * block_b
    if block_h is None:
        # Hidden tile must be a multiple of 128 (lane dim of W1/W2) or full H.
        block_h = _pick_block(H, (512, 256, 128))
    if block_f is None:
        # Tile the in_features reduction only when it is large enough to
        # threaten VMEM; tiles must be multiples of 128 (lane dim of x).
        if F > 2048 and F % 128 == 0:
            block_f = _pick_block(F, (2048, 1024, 512, 256))
        else:
            block_f = F
        # TODO(synk): very large F that is not a multiple of 128 falls back to
        # an untiled (block_b, F) x tile; pad F in the wrapper if that OOMs.
    assert B_pad % block_b == 0 and H % block_h == 0 and F % block_f == 0

    # --- lane-dense output: pad num_cls up to a multiple of 128 -------------
    C_pad = -(-C // 128) * 128
    w3, b3 = params["w3"], params["b3"]
    if C_pad != C:
        w3 = jnp.pad(w3, ((0, 0), (0, C_pad - C)))
        b3 = jnp.pad(b3, ((0, 0), (0, C_pad - C)))

    # --- VMEM budget: generation-aware limit, footprint-driven tile shrink --
    try:
        vmem_cap = int(getattr(pltpu.get_tpu_info(), "vmem_capacity_bytes",
                               64 * 2**20))
    except Exception:  # no TPU info available -> conservative (v7x-sized) cap
        vmem_cap = 64 * 2**20
    vmem_budget = max(32 * 2**20, vmem_cap - 16 * 2**20)  # ~48 MiB v7x, ~112 MiB v5e/v6e

    def _footprint(bb, bh, bf):
        db = 2  # Pallas double-buffers every streamed block
        streamed = itemsize * (bb * bf            # x tile
                               + 2 * bf * bh      # W1, W2 stripes
                               + 2 * bh           # b1, b2
                               + bh * C_pad       # W3 stripe
                               + C_pad            # b3
                               + bb * C_pad)      # output tile
        scratch = 4 * (2 * bb * bh                # a1/a2 f32 accumulators
                       + (0 if acc_in_out else bb * C_pad))
        temps = 4 * 3 * bb * bh                   # a1/a2/gated f32 temporaries
        return db * streamed + scratch + temps

    while _footprint(block_b, block_h, block_f) > vmem_budget:
        if (block_h >= 256 and (block_h // 2) % 128 == 0
                and H % (block_h // 2) == 0):
            block_h //= 2
        elif (block_f >= 512 and (block_f // 2) % 128 == 0
                and F % (block_f // 2) == 0):
            block_f //= 2
        elif block_b >= 512 and B_pad % (block_b // 2) == 0:
            block_b //= 2
        else:
            break
    vmem_limit = int(vmem_budget)

    if B_pad != B:
        x = jnp.pad(x, ((0, B_pad - B), (0, 0)))

    n_btiles = B_pad // block_b
    nh = H // block_h
    nf = F // block_f
    grid = (n_btiles, nh, nf)  # reduction axes (H, F) last

    in_specs = [
        pl.BlockSpec((block_b, block_f), lambda i, h, f: (i, f)),   # x tile
        pl.BlockSpec((block_f, block_h), lambda i, h, f: (f, h)),   # W1^T stripe
        pl.BlockSpec((1, block_h),       lambda i, h, f: (0, h)),   # b1 stripe
        pl.BlockSpec((block_f, block_h), lambda i, h, f: (f, h)),   # W2^T stripe
        pl.BlockSpec((1, block_h),       lambda i, h, f: (0, h)),   # b2 stripe
        pl.BlockSpec((block_h, C_pad),   lambda i, h, f: (h, 0)),   # W3^T stripe
        pl.BlockSpec((1, C_pad),         lambda i, h, f: (0, 0)),   # b3 (full)
    ]
    out_spec = pl.BlockSpec((block_b, C_pad), lambda i, h, f: (i, 0))

    scratch_shapes = [pltpu.VMEM((block_b, block_h), jnp.float32),   # a1 partial
                      pltpu.VMEM((block_b, block_h), jnp.float32)]   # a2 partial
    if not acc_in_out:
        scratch_shapes.append(pltpu.VMEM((block_b, C_pad), jnp.float32))

    # --- cost estimate: weights are re-streamed once per batch tile ---------
    weight_bytes = (params["w1"].nbytes + params["b1"].nbytes
                    + params["w2"].nbytes + params["b2"].nbytes
                    + w3.nbytes + b3.nbytes)
    x_streams = nh if nf > 1 else 1   # x tile is re-fetched per H step only if F is tiled
    cost = pl.CostEstimate(
        flops=int(2 * B_pad * F * (2 * H) + 2 * B_pad * H * C_pad),
        transcendentals=int(B_pad * H),
        bytes_accessed=int(x_streams * B_pad * F * itemsize
                           + n_btiles * weight_bytes
                           + B_pad * C_pad * itemsize),
    )

    out_padded = pl.pallas_call(
        _make_kernel(acc_in_out),
        out_shape=jax.ShapeDtypeStruct((B_pad, C_pad), dtype),
        grid_spec=pltpu.PrefetchScalarGridSpec(
            num_scalar_prefetch=0,
            grid=grid,
            in_specs=in_specs,
            out_specs=out_spec,
            scratch_shapes=scratch_shapes,
        ),
        compiler_params=pltpu.CompilerParams(
            dimension_semantics=("parallel", "arbitrary", "arbitrary"),
            vmem_limit_bytes=vmem_limit,
        ),
        cost_estimate=cost,
    )(x, params["w1"], params["b1"], params["w2"], params["b2"], w3, b3)

    if B_pad != B or C_pad != C:
        out_padded = out_padded[:B, :C]
    return out_padded


def init_params(key, in_features, hidden_size, num_cls, dtype=jnp.float32):
    """Deterministic init mimicking nn.Linear's U(-1/sqrt(fan_in), 1/sqrt(fan_in)).
    Weights are stored transposed: (fan_in, fan_out)."""
    ks = jax.random.split(key, 6)

    def linear(kw, kb, fan_in, fan_out):
        bound = 1.0 / jnp.sqrt(jnp.array(fan_in, jnp.float32))
        w = jax.random.uniform(kw, (fan_in, fan_out), dtype, -bound, bound)
        b = jax.random.uniform(kb, (1, fan_out), dtype, -bound, bound)
        return w, b

    w1, b1 = linear(ks[0], ks[1], in_features, hidden_size)
    w2, b2 = linear(ks[2], ks[3], in_features, hidden_size)
    w3, b3 = linear(ks[4], ks[5], hidden_size, num_cls)
    return {"w1": w1, "b1": b1, "w2": w2, "b2": b2, "w3": w3, "b3": b3}


def mlp_reference(x, p):
    """Pure-JAX reference of the PyTorch forward."""
    a1 = x @ p["w1"] + p["b1"]
    a2 = x @ p["w2"] + p["b2"]
    return (jax.nn.silu(a2) * a1) @ p["w3"] + p["b3"]


if __name__ == "__main__":
    key = jax.random.PRNGKey(0)
    k_param, k_x, k_x2 = jax.random.split(key, 3)

    batch, in_features, hidden_size, num_cls = 8, 32, 64, 16
    params = init_params(k_param, in_features, hidden_size, num_cls)

    # Main check: clean small shape.
    x = jax.random.normal(k_x, (batch, in_features), jnp.float32)
    out = jax.block_until_ready(mlp_forward(x, params))
    ref = mlp_reference(x, params)
    assert out.shape == (batch, num_cls)
    assert jnp.allclose(out, ref, atol=1e-5, rtol=1e-5)

    # Second check: awkward (non power-of-two) batch exercises the padding path.
    x2 = jax.random.normal(k_x2, (10, in_features), jnp.float32)
    out2 = jax.block_until_ready(mlp_forward(x2, params))
    ref2 = mlp_reference(x2, params)
    assert out2.shape == (10, num_cls)
    assert jnp.allclose(out2, ref2, atol=1e-5, rtol=1e-5)

    print("KERNEL_OK")
</pallas_src>

<mosaic_0001>
module attributes {stable_mosaic.version = 11 : i64} {
  func.func @kernel(%arg0: i32, %arg1: i32, %arg2: i32, %arg3: memref<8x32xf32, #tpu.memory_space<vmem>>, %arg4: memref<32x64xf32, #tpu.memory_space<vmem>>, %arg5: memref<1x64xf32, #tpu.memory_space<vmem>>, %arg6: memref<32x64xf32, #tpu.memory_space<vmem>>, %arg7: memref<1x64xf32, #tpu.memory_space<vmem>>, %arg8: memref<64x128xf32, #tpu.memory_space<vmem>>, %arg9: memref<1x128xf32, #tpu.memory_space<vmem>>, %arg10: memref<8x128xf32, #tpu.memory_space<vmem>>, %arg11: memref<8x64xf32, #tpu.memory_space<vmem>>, %arg12: memref<8x64xf32, #tpu.memory_space<vmem>>) attributes {dimension_semantics = [#tpu.dimension_semantics<parallel>, #tpu.dimension_semantics<arbitrary>, #tpu.dimension_semantics<arbitrary>], iteration_bounds = array<i64: 1, 1, 1>, scalar_prefetch = 0 : i64, scratch_operands = 2 : i64, tpu.core_type = #tpu.core_type<tc>, window_params = [{transform_indices = @transform_0, window_bounds = array<i64: 8, 32>}, {transform_indices = @transform_1, window_bounds = array<i64: 32, 64>}, {transform_indices = @transform_2, window_bounds = array<i64: 1, 64>}, {transform_indices = @transform_3, window_bounds = array<i64: 32, 64>}, {transform_indices = @transform_4, window_bounds = array<i64: 1, 64>}, {transform_indices = @transform_5, window_bounds = array<i64: 64, 128>}, {pipeline_mode = #tpu.pipeline_mode<synchronous>, transform_indices = @transform_6, window_bounds = array<i64: 1, 128>}, {transform_indices = @transform_7, window_bounds = array<i64: 8, 128>}]} {
    %c0_i32 = arith.constant 0 : i32
    %0 = arith.cmpi eq, %arg1, %c0_i32 : i32
    %c0_i32_0 = arith.constant 0 : i32
    %1 = arith.cmpi eq, %arg2, %c0_i32_0 : i32
    %2 = arith.andi %0, %1 : i1
    %3 = arith.extui %2 : i1 to i32
    %c0_i32_1 = arith.constant 0 : i32
    %4 = arith.cmpi ne, %3, %c0_i32_1 : i32
    scf.if %4 {
      %cst_23 = arith.constant 0.000000e+00 : f32
      %27 = vector.broadcast %cst_23 : f32 to vector<8x128xf32>
      %c0_24 = arith.constant 0 : index
      %c0_25 = arith.constant 0 : index
      %28 = vector.load %arg10[%c0_24, %c0_25] : memref<8x128xf32, #tpu.memory_space<vmem>>, vector<8x128xf32>
      tpu.vector_store %arg10[%c0_24, %c0_25], %27 {strides = array<i32>} : memref<8x128xf32, #tpu.memory_space<vmem>>, vector<8x128xf32>,
    } else {
    }
    %c0_i32_2 = arith.constant 0 : i32
    %5 = arith.cmpi eq, %arg2, %c0_i32_2 : i32
    %6 = arith.extui %5 : i1 to i32
    %c0_i32_3 = arith.constant 0 : i32
    %7 = arith.cmpi ne, %6, %c0_i32_3 : i32
    scf.if %7 {
      %cst_23 = arith.constant 0.000000e+00 : f32
      %27 = vector.broadcast %cst_23 : f32 to vector<8x64xf32>
      %c0_24 = arith.constant 0 : index
      %c0_25 = arith.constant 0 : index
      %28 = vector.load %arg11[%c0_24, %c0_25] : memref<8x64xf32, #tpu.memory_space<vmem>>, vector<8x64xf32>
      tpu.vector_store %arg11[%c0_24, %c0_25], %27 {strides = array<i32>} : memref<8x64xf32, #tpu.memory_space<vmem>>, vector<8x64xf32>,
      %cst_26 = arith.constant 0.000000e+00 : f32
      %29 = vector.broadcast %cst_26 : f32 to vector<8x64xf32>
      %c0_27 = arith.constant 0 : index
      %c0_28 = arith.constant 0 : index
      %30 = vector.load %arg12[%c0_27, %c0_28] : memref<8x64xf32, #tpu.memory_space<vmem>>, vector<8x64xf32>
      tpu.vector_store %arg12[%c0_27, %c0_28], %29 {strides = array<i32>} : memref<8x64xf32, #tpu.memory_space<vmem>>, vector<8x64xf32>,
    } else {
    }
    %c0 = arith.constant 0 : index
    %c0_4 = arith.constant 0 : index
    %8 = vector.load %arg3[%c0, %c0_4] : memref<8x32xf32, #tpu.memory_space<vmem>>, vector<8x32xf32>
    %c0_5 = arith.constant 0 : index
    %c0_6 = arith.constant 0 : index
    %9 = vector.load %arg11[%c0_5, %c0_6] : memref<8x64xf32, #tpu.memory_space<vmem>>, vector<8x64xf32>
    %c0_7 = arith.constant 0 : index
    %c0_8 = arith.constant 0 : index
    %10 = vector.load %arg4[%c0_7, %c0_8] : memref<32x64xf32, #tpu.memory_space<vmem>>, vector<32x64xf32>
    %cst = arith.constant dense<0.000000e+00> : vector<8x64xf32>
    %11 = tpu.matmul %8, %10, %cst {dimension_numbers = #tpu.dot_dimension_numbers<[1], [0], [0], [1], [0, 0, 1, 1], [], []>} : vector<8x32xf32>, vector<32x64xf32>, vector<8x64xf32> -> vector<8x64xf32>
    %12 = arith.addf %9, %11 : vector<8x64xf32>
    %c0_9 = arith.constant 0 : index
    %c0_10 = arith.constant 0 : index
    %13 = vector.load %arg11[%c0_9, %c0_10] : memref<8x64xf32, #tpu.memory_space<vmem>>, vector<8x64xf32>
    tpu.vector_store %arg11[%c0_9, %c0_10], %12 {strides = array<i32>} : memref<8x64xf32, #tpu.memory_space<vmem>>, vector<8x64xf32>,
    %c0_11 = arith.constant 0 : index
    %c0_12 = arith.constant 0 : index
    %14 = vector.load %arg12[%c0_11, %c0_12] : memref<8x64xf32, #tpu.memory_space<vmem>>, vector<8x64xf32>
    %c0_13 = arith.constant 0 : index
    %c0_14 = arith.constant 0 : index
    %15 = vector.load %arg6[%c0_13, %c0_14] : memref<32x64xf32, #tpu.memory_space<vmem>>, vector<32x64xf32>
    %cst_15 = arith.constant dense<0.000000e+00> : vector<8x64xf32>
    %16 = tpu.matmul %8, %15, %cst_15 {dimension_numbers = #tpu.dot_dimension_numbers<[1], [0], [0], [1], [0, 0, 1, 1], [], []>} : vector<8x32xf32>, vector<32x64xf32>, vector<8x64xf32> -> vector<8x64xf32>
    %17 = arith.addf %14, %16 : vector<8x64xf32>
    %c0_16 = arith.constant 0 : index
    %c0_17 = arith.constant 0 : index
    %18 = vector.load %arg12[%c0_16, %c0_17] : memref<8x64xf32, #tpu.memory_space<vmem>>, vector<8x64xf32>
    tpu.vector_store %arg12[%c0_16, %c0_17], %17 {strides = array<i32>} : memref<8x64xf32, #tpu.memory_space<vmem>>, vector<8x64xf32>,
    %c0_i32_18 = arith.constant 0 : i32
    %19 = arith.cmpi eq, %arg2, %c0_i32_18 : i32
    %20 = arith.extui %19 : i1 to i32
    %c0_i32_19 = arith.constant 0 : i32
    %21 = arith.cmpi ne, %20, %c0_i32_19 : i32
    scf.if %21 {
      %c0_23 = arith.constant 0 : index
      %c0_24 = arith.constant 0 : index
      %27 = vector.load %arg11[%c0_23, %c0_24] : memref<8x64xf32, #tpu.memory_space<vmem>>, vector<8x64xf32>
      %c0_25 = arith.constant 0 : index
      %c0_26 = arith.constant 0 : index
      %28 = vector.load %arg5[%c0_25, %c0_26] : memref<1x64xf32, #tpu.memory_space<vmem>>, vector<1x64xf32>
      %29 = vector.broadcast %28 : vector<1x64xf32> to vector<8x64xf32>
      %30 = arith.addf %27, %29 : vector<8x64xf32>
      %c0_27 = arith.constant 0 : index
      %c0_28 = arith.constant 0 : index
      %31 = vector.load %arg12[%c0_27, %c0_28] : memref<8x64xf32, #tpu.memory_space<vmem>>, vector<8x64xf32>
      %c0_29 = arith.constant 0 : index
      %c0_30 = arith.constant 0 : index
      %32 = vector.load %arg7[%c0_29, %c0_30] : memref<1x64xf32, #tpu.memory_space<vmem>>, vector<1x64xf32>
      %33 = vector.broadcast %32 : vector<1x64xf32> to vector<8x64xf32>
      %34 = arith.addf %31, %33 : vector<8x64xf32>
      %35 = arith.negf %34 : vector<8x64xf32>
      %36 = math.exp %35 : vector<8x64xf32>
      %cst_31 = arith.constant 1.000000e+00 : f32
      %37 = vector.broadcast %cst_31 : f32 to vector<8x64xf32>
      %38 = arith.addf %37, %36 : vector<8x64xf32>
      %39 = arith.divf %37, %38 : vector<8x64xf32>
      %40 = arith.mulf %34, %39 : vector<8x64xf32>
      %41 = arith.mulf %40, %30 : vector<8x64xf32>
      %c0_32 = arith.constant 0 : index
      %c0_33 = arith.constant 0 : index
      %42 = vector.load %arg10[%c0_32, %c0_33] : memref<8x128xf32, #tpu.memory_space<vmem>>, vector<8x128xf32>
      %c0_34 = arith.constant 0 : index
      %c0_35 = arith.constant 0 : index
      %43 = vector.load %arg8[%c0_34, %c0_35] : memref<64x128xf32, #tpu.memory_space<vmem>>, vector<64x128xf32>
      %cst_36 = arith.constant dense<0.000000e+00> : vector<8x128xf32>
      %44 = tpu.matmul %41, %43, %cst_36 {dimension_numbers = #tpu.dot_dimension_numbers<[1], [0], [0], [1], [0, 0, 1, 1], [], []>} : vector<8x64xf32>, vector<64x128xf32>, vector<8x128xf32> -> vector<8x128xf32>
      %45 = arith.addf %42, %44 : vector<8x128xf32>
      %c0_37 = arith.constant 0 : index
      %c0_38 = arith.constant 0 : index
      %46 = vector.load %arg10[%c0_37, %c0_38] : memref<8x128xf32, #tpu.memory_space<vmem>>, vector<8x128xf32>
      tpu.vector_store %arg10[%c0_37, %c0_38], %45 {strides = array<i32>} : memref<8x128xf32, #tpu.memory_space<vmem>>, vector<8x128xf32>,
    } else {
    }
    %c0_i32_20 = arith.constant 0 : i32
    %22 = arith.cmpi eq, %arg1, %c0_i32_20 : i32
    %c0_i32_21 = arith.constant 0 : i32
    %23 = arith.cmpi eq, %arg2, %c0_i32_21 : i32
    %24 = arith.andi %22, %23 : i1
    %25 = arith.extui %24 : i1 to i32
    %c0_i32_22 = arith.constant 0 : i32
    %26 = arith.cmpi ne, %25, %c0_i32_22 : i32
    scf.if %26 {
      %c0_23 = arith.constant 0 : index
      %c0_24 = arith.constant 0 : index
      %27 = vector.load %arg10[%c0_23, %c0_24] : memref<8x128xf32, #tpu.memory_space<vmem>>, vector<8x128xf32>
      %c0_25 = arith.constant 0 : index
      %c0_26 = arith.constant 0 : index
      %28 = vector.load %arg9[%c0_25, %c0_26] : memref<1x128xf32, #tpu.memory_space<vmem>>, vector<1x128xf32>
      %29 = vector.broadcast %28 : vector<1x128xf32> to vector<8x128xf32>
      %30 = arith.addf %27, %29 : vector<8x128xf32>
      %c0_27 = arith.constant 0 : index
      %c0_28 = arith.constant 0 : index
      %31 = vector.load %arg10[%c0_27, %c0_28] : memref<8x128xf32, #tpu.memory_space<vmem>>, vector<8x128xf32>
      tpu.vector_store %arg10[%c0_27, %c0_28], %30 {strides = array<i32>} : memref<8x128xf32, #tpu.memory_space<vmem>>, vector<8x128xf32>,
    } else {
    }
    return
  }
  func.func @transform_0(%arg0: i32, %arg1: i32, %arg2: i32) -> (i32, i32) {
    %c0_i32 = arith.constant 0 : i32
    return %arg0, %arg2 : i32, i32
  }
  func.func @transform_1(%arg0: i32, %arg1: i32, %arg2: i32) -> (i32, i32) {
    %c0_i32 = arith.constant 0 : i32
    return %arg2, %arg1 : i32, i32
  }
  func.func @transform_2(%arg0: i32, %arg1: i32, %arg2: i32) -> (i32, i32) {
    %c0_i32 = arith.constant 0 : i32
    %c0_i32_0 = arith.constant 0 : i32
    return %c0_i32, %arg1 : i32, i32
  }
  func.func @transform_3(%arg0: i32, %arg1: i32, %arg2: i32) -> (i32, i32) {
    %c0_i32 = arith.constant 0 : i32
    return %arg2, %arg1 : i32, i32
  }
  func.func @transform_4(%arg0: i32, %arg1: i32, %arg2: i32) -> (i32, i32) {
    %c0_i32 = arith.constant 0 : i32
    %c0_i32_0 = arith.constant 0 : i32
    return %c0_i32, %arg1 : i32, i32
  }
  func.func @transform_5(%arg0: i32, %arg1: i32, %arg2: i32) -> (i32, i32) {
    %c0_i32 = arith.constant 0 : i32
    %c0_i32_0 = arith.constant 0 : i32
    return %arg1, %c0_i32 : i32, i32
  }
  func.func @transform_6(%arg0: i32, %arg1: i32, %arg2: i32) -> (i32, i32) {
    %c0_i32 = arith.constant 0 : i32
    %c0_i32_0 = arith.constant 0 : i32
    %c0_i32_1 = arith.constant 0 : i32
    return %c0_i32, %c0_i32_0 : i32, i32
  }
  func.func @transform_7(%arg0: i32, %arg1: i32, %arg2: i32) -> (i32, i32) {
    %c0_i32 = arith.constant 0 : i32
    %c0_i32_0 = arith.constant 0 : i32
    return %arg0, %c0_i32 : i32, i32
  }
}

</mosaic_0001>

<bundles_post_ra>
// kernel: tpu_custom_call.1
= control target key start
LH: loop header
LB: loop body
LE: loop exit
PB: predicated region body
PF: predicated region fallthrough
CT: control target
= control target key end

     0   :  { %12 = vsyncpa [#allocation5], 0  ;;  %s483_s0 = inlined_call_operand.hbm [shape: f32[8,32], index: 0, kind: input, shape index: {}]   ;;  %s484_s1 = inlined_call_operand.hbm [shape: f32[32,64], index: 1, kind: input, shape index: {}]   ;;  %s485_s2 = inlined_call_operand.vmem [shape: f32[1,64], index: 2, kind: input, shape index: {}]   ;;  %s486_s3 = inlined_call_operand.hbm [shape: f32[32,64], index: 3, kind: input, shape index: {}]   ;;  %s487_s4 = inlined_call_operand.vmem [shape: f32[1,64], index: 4, kind: input, shape index: {}]   ;;  %s488_s5 = inlined_call_operand.hbm [shape: f32[64,128], index: 5, kind: input, shape index: {}]   ;;  %s489_s6 = inlined_call_operand.vmem [shape: f32[1,128], index: 6, kind: input, shape index: {}]   ;;  %s490_s7 = inlined_call_operand.hbm [shape: f32[8,128], index: 7, kind: output, shape index: {}]  }
   0x1   :  { %13 = vsyncpa [#allocation8], 0 }
   0x2   :  { %14 = vsyncpa [#allocation11], 0  ;;  %s31_s26 = sshll.u32 %s484_s1, 4  ;;  %s32_s26 = int_to_ptr.hbm [resolvable:$true] %s31_s26 }
   0x3   :  { %15 = vsyncpa [#allocation6], 0  ;;  %s406_s27 = smov [#allocation7]   ;;  %s21_s8 = sshll.u32 %s483_s0, 4  ;;  %s22_s8 = int_to_ptr.hbm [resolvable:$true] %s21_s8 }
   0x4   :  { %s33_s28 = sshll.u32 %s406_s27, 4  ;;  %s407_s9 = smov 128   ;;  %s34_s28 = int_to_ptr.vmem [resolvable:$true] %s33_s28 }
   0x5   :  { %s408_s10 = smov 8   ;;  %s409_s11 = smov [#allocation4]  }
   0x6   :  { %39 = dma.hbm_to_vmem [thread:$0]  %s32_s26, 512, %s34_s28, [#allocation8], %s407_s9, %s407_s9, %s408_s10  }
   0x7   :  { %s23_s12 = sshll.u32 %s409_s11, 4  ;;  %s46_s15 = sshll.u32 %s486_s3, 4  ;;  %s24_s12 = int_to_ptr.vmem [resolvable:$true] %s23_s12  ;;  %s47_s15 = int_to_ptr.hbm [resolvable:$true] %s46_s15 }
   0x8   :  { %26 = dma.hbm_to_vmem [thread:$0]  %s22_s8, 128, %s24_s12, [#allocation5]  }
   0x9   :  { %s61_s17 = sshll.u32 %s488_s5, 4  ;;  %s410_s18 = smov [#allocation9]   ;;  %s62_s17 = int_to_ptr.hbm [resolvable:$true] %s61_s17 }
   0xa   :  { %s48_s19 = sshll.u32 %s410_s18, 4  ;;  %s411_s0 = smov [#allocation10]   ;;  %s49_s19 = int_to_ptr.vmem [resolvable:$true] %s48_s19 }
   0xb   :  { %54 = dma.hbm_to_vmem [thread:$0]  %s47_s15, 512, %s49_s19, [#allocation8], %s407_s9, %s407_s9, %s408_s10  }
   0xc   :  { %s63_s20 = sshll.u32 %s411_s0, 4  ;;  %s64_s20 = int_to_ptr.vmem [resolvable:$true] %s63_s20 }
   0xd   :  { %69 = dma.hbm_to_vmem [thread:$0]  %s62_s17, 1024, %s64_s20, [#allocation11], %s407_s9, %s407_s9, %s408_s10  }
   0xe   :  { %398 = dma.done.wait [#allocation5], 128  }
   0xf   :  { %399 = vsyncadd [#allocation5], 4294967168 }
  0x10   :  { %400 = dma.done.wait [#allocation8], 1024  }
  0x11   :  { %401 = vsyncadd [#allocation8], 4294966272 }
  0x12   :  { %402 = dma.done.wait [#allocation11], 1024  }
  0x13   :  { %403 = vsyncadd [#allocation11], 4294966272  ;;  %vm98_vm0 = vcmask 523264   ;;  %v412_v0 = vmov 0.0   ;;  %v138_v1 = vld [vmem:[#allocation9 + $0x18] sm:$0xff]  ;;  %v137_v2 = vld [vmem:[#allocation9 + $0x10] sm:$0xff] }
  0x14   :  { %100 = vst.msk [vmem:[#allocation3] sm:$0xff] %vm98_vm0, %v412_v0  ;;  %151 = vmatpush.msra.mxu1 %v138_v1  ;;  %v106_v3 = vld [vmem:[#allocation7 + $0x18] sm:$0xff]  ;;  %v136_v4 = vld [vmem:[#allocation9 + $0x8] sm:$0xff]  ;;  %v105_v5 = vld [vmem:[#allocation7 + $0x10] sm:$0xff]  ;;  %vm107_vm1 = vcmask 261120   ;;  %s247_s27 = sshll.u32 %s490_s7, 4  ;;  %s248_s27 = int_to_ptr.hbm [resolvable:$true] %s247_s27 }
  0x15   :  { %99 = vst.msk [vmem:[#allocation2] sm:$0xff] %vm98_vm0, %v412_v0  ;;  %123 = vmatpush.msra.mxu0 %v106_v3  ;;  %v104_v6 = vld [vmem:[#allocation7 + $0x8] sm:$0xff]  ;;  %v135_v7 = vld [vmem:[#allocation9] sm:$0xff]  ;;  %v101_v8 = vld [vmem:[#allocation4] sm:$0xff] }
  0x16   :  { %152 = vmatpush.msra.mxu1 %v137_v2  ;;  %v103_v9 = vld [vmem:[#allocation7] sm:$0xff]  ;;  %v205_v10 = vld [vmem:[#allocation10 + $0x38] sm:$0xff]  ;;  %v204_v11 = vld [vmem:[#allocation10 + $0x30] sm:$0xff] }
  0x17   :  { %124 = vmatpush.msra.mxu0 %v105_v5  ;;  %217 = vmatpush.msra.mxu2 %v205_v10  ;;  %v203_v12 = vld [vmem:[#allocation10 + $0x28] sm:$0xff]  ;;  %v202_v13 = vld [vmem:[#allocation10 + $0x20] sm:$0xff]  ;;  %v201_v14 = vld [vmem:[#allocation10 + $0x18] sm:$0xff] }
  0x18   :  { %153 = vmatpush.msra.mxu1 %v136_v4  ;;  %v200_v15 = vld [vmem:[#allocation10 + $0x10] sm:$0xff]  ;;  %v199_v16 = vld [vmem:[#allocation10 + $0x8] sm:$0xff]  ;;  %v198_v17 = vld [vmem:[#allocation10] sm:$0xff] }
  0x19   :  { %125 = vmatpush.msra.mxu0 %v104_v6  ;;  %218 = vmatpush.msra.mxu2 %v204_v11  ;;  %v272_v24 = vld [vmem:[%s487_s4] ss:$0 sm:$0xff] }
  0x1a   :  { %154 = vmatpush.msra.mxu1 %v135_v7  ;;  %v271_v34 = vld [vmem:[%s485_s2] ss:$0 sm:$0xff]  ;;  %s413_s2 = smov [#allocation12]  }
  0x1b   :  { %260 = vmatmul.msk.f32.vlgmr.msra.gmra.mxu1 %vm107_vm1, %v101_v8  ;;  %126 = vmatpush.msra.mxu0 %v103_v9  ;;  %v134_v18 = vld [vmem:[#allocation3] sm:$0xff]  ;;  %v273_v45 = vld [vmem:[%s489_s6] ss:$0 sm:$0xff]  ;;  %s245_s24 = sshll.u32 %s413_s2, 4  ;;  %s246_s24 = int_to_ptr.vmem [resolvable:$true] %s245_s24 }
  0x1c   :  { %259 = vmatmul.msk.f32.vlgmr.msra.gmra.mxu0 %vm107_vm1, %v101_v8  ;;  %219 = vmatpush.msra.mxu2 %v203_v12  ;;  %v102_v19 = vld [vmem:[#allocation2] sm:$0xff] }
  0x1e   :  { %220 = vmatpush.msra.mxu2 %v202_v13 }
  0x20   :  { %221 = vmatpush.msra.mxu2 %v201_v14 }
  0x22   :  { %222 = vmatpush.msra.mxu2 %v200_v15 }
  0x24   :  { %223 = vmatpush.msra.mxu2 %v199_v16 }
  0x26   :  { %224 = vmatpush.msra.mxu2 %v198_v17 }
  0x98   :  { %v156_v20 = vpop.f32.mrf.mxu1 }
  0x99   :  { %v159_v21 = vadd.f32 %v156_v20, %v134_v18  ;;  %v128_v22 = vpop.f32.mrf.mxu0 }
  0x9a   :  { %v131_v23 = vadd.f32 %v128_v22, %v102_v19 }
  0x9b   :  { %160 = vst.msk [vmem:[#allocation3] sm:$0xff] %vm98_vm0, %v159_v21 }
  0x9c   :  { %133 = vst.msk [vmem:[#allocation2] sm:$0xff] %vm98_vm0, %v131_v23 }
  0xa2   :  { %v170_v25 = vld [vmem:[#allocation3] sm:$0xff] }
  0xa3   :  { %v175_v26 = vadd.f32 %v272_v24, %v170_v25  ;;  %v164_v37 = vld [vmem:[#allocation2] sm:$0xff] }
  0xa4   :  { %v169_v40 = vadd.f32 %v271_v34, %v164_v37 }
  0xa5   :  { %v261_v27 = vmul.f32 -1.442695, %v175_v26 }
  0xa7   :  { %274 = vpow2.f32 %v261_v27 }
  0xad   :  { %v275_v28 = vpop.eup %274 }
  0xae   :  { %v179_v29 = vadd.f32 1.0, %v275_v28 }
  0xb0   :  { %276 = vrcp.f32 %v179_v29  ;;  %v191_v33 = vand.u32 2147483648, %v179_v29  ;;  %v189_v36 = vand.u32 2147483647, %v179_v29  ;;  %vm185_vm3 = vweird.f32 %v179_v29 }
  0xb2   :  { %v192_v39 = vor.u32 1.1754944e-38, %v191_v33  ;;  %vm190_vm5 = vcmp.eq.f32.partialorder %v189_v36, 8.507059e+37 }
  0xb6   :  { %v277_v30 = vpop.eup %276 }
  0xb7   :  { %v181_v31 = vmul.f32 %v277_v30, %v179_v29  ;;  %vm186_vm2 = vweird.f32 %v277_v30 }
  0xb8   :  { %vm187_vm4 = vmor %vm185_vm3, %vm186_vm2 }
  0xb9   :  { %v182_v32 = vsub.f32 1.0, %v181_v31 }
  0xbb   :  { %v183_v35 = vmul.f32 %v277_v30, %v182_v32 }
  0xbd   :  { %v184_v38 = vadd.f32 %v277_v30, %v183_v35 }
  0xbf   :  { %v188_v41 = vsel %vm187_vm4, %v277_v30, %v184_v38 }
  0xc0   :  { %v193_v42 = vsel %vm190_vm5, %v192_v39, %v188_v41 }
  0xc1   :  { %v195_v43 = vmul.f32 %v193_v42, %v175_v26 }
  0xc3   :  { %v196_v44 = vmul.f32 %v195_v43, %v169_v40 }
  0xc5   :  { %262 = vmatmul.msk.f32.vlgmr.msra.gmra.mxu2 %vm98_vm0, %v196_v44 }
 0x148   :  { %v226_v46 = vpop.f32.mrf.mxu2 }
 0x149   :  { %v238_v47 = vadd.f32 %v273_v45, %v226_v46 }
 0x14b   :  { %239 = vst [vmem:[#allocation12] sm:$0xff] %v238_v47 }
 0x14c   :  { %250 = dma.vmem_to_hbm [thread:$0]  %s246_s24, 128, %s248_s27, [#allocation6]  }
 0x14d   :  { %404 = dma.done.wait [#allocation6], 128  }
 0x14e   :  { %405 = vsyncadd [#allocation6], 4294967168 }
 0x14f   :  { %255 = vsyncpa [#allocation5], 1 }
 0x150   :  { %256 = vsyncpa [#allocation8], 1 }
 0x151   :  { %257 = vsyncpa [#allocation11], 1 }
 0x152   :  { %258 = vsyncpa [#allocation6], 1 }

</bundles_post_ra>
